<compile_context>
chip_gen: v7x
topology: tpu7x:2x2x1
jax: 0.10.0
libtpu: 0.0.40
codegen_flags: <defaults>
</compile_context>

<pallas_src>
import numpy as np
import jax
import jax.numpy as jnp
from jax.experimental import pallas as pl
from jax.experimental.pallas import tpu as pltpu


# ---------------------------------------------------------------------------
# Pallas kernel: one (tile_n, Din) x (Din, Dout_pad) matmul per grid step.
# ---------------------------------------------------------------------------
def _linear_readout_kernel(x_ref, w_ref, o_ref):
    # In-kernel cast of x to the weight/MXU dtype (no-op when W is f32):
    # a free VPU op, avoids a separate XLA cast pass over x in HBM.
    x = x_ref[...].astype(w_ref.dtype)
    o_ref[...] = jnp.dot(
        x, w_ref[...], preferred_element_type=jnp.float32
    ).astype(o_ref.dtype)


def _round_up(x: int, m: int) -> int:
    return ((x + m - 1) // m) * m


def _vmem_budget_bytes() -> int:
    """Generation-aware VMEM budget: ~60% of physical, capped at 48 MiB.
    -> ~38 MiB on v7x (64 MiB/TC), 48 MiB on v5e/v6e (128 MiB)."""
    try:
        cap = int(pltpu.get_tpu_info().vmem_capacity_bytes)
    except Exception:
        cap = 64 * 1024 * 1024  # conservative fallback (v7x per-core VMEM)
    return min(int(cap * 0.6), 48 * 1024 * 1024)


def _pick_tile_n(n: int, din: int, dout_pad: int,
                 x_itemsize: int, w_itemsize: int, vmem_budget: int) -> int:
    """Largest row tile (multiple of 8, <= 8192) fitting the VMEM budget,
    while keeping >= 2 grid steps for large N (v7x megacore)."""
    # double-buffered x tile (native dtype) + double-buffered f32 out tile:
    per_row = 2 * din * x_itemsize + 2 * dout_pad * 4
    # resident weight; index_map is constant so it is not re-DMA'd, but
    # account for its (double-buffered) VMEM allocation.
    w_bytes = 2 * din * dout_pad * w_itemsize
    avail = max(vmem_budget - w_bytes, per_row * 8)
    tile = max(8, (avail // per_row // 8) * 8)
    tile = min(tile, 8192)
    if n >= 1024:
        # v7x has 2 TensorCores: make sure the "parallel" axis has >= 2 steps.
        tile = min(tile, _round_up(-(-n // 2), 8))
    tile = min(tile, _round_up(n, 8))
    return int(tile)


def linear_readout_matmul(x, w_big, dout_real: int, *,
                          out_dtype=jnp.float32, return_padded: bool = False):
    """x: [N, Din] (native dtype, typically f32), w_big: [Din, Dout_pad] with
    Dout_pad a multiple of 128 (padding columns are zero).  Returns
    [N, dout_real] in out_dtype (or the padded [N, Dout_pad] block)."""
    N, Din = x.shape
    Din_w, Dout_pad = w_big.shape
    assert Din == Din_w and Dout_pad % 128 == 0

    budget = _vmem_budget_bytes()
    tile_n = _pick_tile_n(N, Din, Dout_pad,
                          jnp.dtype(x.dtype).itemsize,
                          jnp.dtype(w_big.dtype).itemsize, budget)
    grid = (pl.cdiv(N, tile_n),)   # partial last block handled by Pallas masking

    bytes_accessed = int(N * Din * jnp.dtype(x.dtype).itemsize
                         + Din * Dout_pad * jnp.dtype(w_big.dtype).itemsize
                         + N * Dout_pad * jnp.dtype(out_dtype).itemsize)

    out = pl.pallas_call(
        _linear_readout_kernel,
        out_shape=jax.ShapeDtypeStruct((N, Dout_pad), out_dtype),
        grid=grid,
        in_specs=[
            pl.BlockSpec((tile_n, Din), lambda i: (i, 0)),     # streamed rows of x
            pl.BlockSpec((Din, Dout_pad), lambda i: (0, 0)),   # resident weight
        ],
        out_specs=pl.BlockSpec((tile_n, Dout_pad), lambda i: (i, 0)),  # lane-dense
        compiler_params=pltpu.CompilerParams(
            dimension_semantics=("parallel",),    # megacore sharding on v7x
            vmem_limit_bytes=int(budget),
        ),
        cost_estimate=pl.CostEstimate(
            flops=int(2 * N * Din * Dout_pad),
            transcendentals=0,
            bytes_accessed=bytes_accessed,
        ),
    )(x, w_big)

    if return_padded:
        return out                       # for fusion-friendly consumers
    return out[:, :dout_real] if dout_real != Dout_pad else out


# ---------------------------------------------------------------------------
# Parameter setup (host-side glue): e3nn-style per-path weights expanded into
# the dense block matrix, path normalization baked in, output columns
# zero-padded to a lane-dense multiple of 128.
# ---------------------------------------------------------------------------
class LinearReadoutBlockPallas:
    """Mirrors mace.modules.blocks.LinearReadoutBlock with irreps_in = 'Mx0e + Mx1o'."""

    def __init__(self, mul_in: int, n_energies: int, compute_nacs: bool, key,
                 mxu_dtype=jnp.bfloat16):
        self.mul_in = mul_in
        self.n_energies = n_energies
        self.compute_nacs = compute_nacs
        self.mxu_dtype = mxu_dtype
        self.n_pairs = int(n_energies * (n_energies - 1) // 2) if compute_nacs else 0

        self.dim_in = mul_in * 1 + mul_in * 3            # 0e block + 1o block
        self.dim_out = n_energies + 3 * self.n_pairs
        self.dim_out_pad = _round_up(self.dim_out, 128)

        k0, k1 = jax.random.split(key)
        norm = 1.0 / np.sqrt(mul_in)                     # e3nn 'element' path normalization

        # Effective per-path weights, rounded exactly as the kernel sees them
        # (mxu_dtype round-trip is the identity when mxu_dtype == float32).
        w0 = jax.random.normal(k0, (mul_in, n_energies), dtype=jnp.float32) * norm
        self._w0_eff = np.asarray(w0.astype(mxu_dtype).astype(jnp.float32))

        W = np.zeros((self.dim_in, self.dim_out_pad), dtype=np.float32)
        W[0:mul_in, 0:n_energies] = self._w0_eff

        self._w1_eff = None
        if self.compute_nacs and self.n_pairs > 0:
            w1 = jax.random.normal(k1, (mul_in, self.n_pairs), dtype=jnp.float32) * norm
            self._w1_eff = np.asarray(w1.astype(mxu_dtype).astype(jnp.float32))
            # 1o block: input row = mul_in + m*3 + c, output col = n_energies + k*3 + c
            # (mul-major, m-component minor — e3nn layout).  Column slice is bounded
            # at dim_out so the lane-padding columns stay exactly zero.
            for c in range(3):
                W[mul_in + c::3, self.n_energies + c:self.dim_out:3] = self._w1_eff

        self.w_big = jnp.asarray(W).astype(mxu_dtype)

    def __call__(self, x):
        return linear_readout_matmul(x, self.w_big, self.dim_out)

    # pure-numpy reference (e3nn o3.Linear semantics, same mxu_dtype rounding)
    def reference(self, x):
        x = np.asarray(jnp.asarray(x).astype(self.mxu_dtype).astype(jnp.float32))
        N = x.shape[0]
        x0 = x[:, : self.mul_in]
        outs = [x0 @ self._w0_eff]
        if self.compute_nacs and self.n_pairs > 0:
            x1 = x[:, self.mul_in:].reshape(N, self.mul_in, 3)
            y1 = np.einsum("nmi,mk->nki", x1, self._w1_eff)
            outs.append(y1.reshape(N, 3 * self.n_pairs))
        return np.concatenate(outs, axis=1).astype(np.float32)


if __name__ == "__main__":
    key = jax.random.PRNGKey(0)
    k_x, k_w, k_w2 = jax.random.split(key, 3)

    # 1) irreps_in = "32x0e + 32x1o" (dim 128), N=8 nodes, n_energies=2,
    #    compute_nacs=True -> irreps_out = "2x0e + 1x1o" (dim 5)
    N, mul_in, n_energies = 8, 32, 2
    block = LinearReadoutBlockPallas(mul_in, n_energies, compute_nacs=True, key=k_w)
    x = jax.random.normal(k_x, (N, block.dim_in), dtype=jnp.float32)
    out = jax.block_until_ready(block(x))
    assert out.shape == (N, block.dim_out) and out.dtype == jnp.float32
    np.testing.assert_allclose(np.asarray(out), block.reference(x), rtol=1e-4, atol=1e-4)

    # 2) multi-pair NACs ("3x0e + 3x1o" output) with an odd node count
    #    (exercises the fixed W expansion and the partial last grid block)
    N2, n_energies2 = 37, 3
    block2 = LinearReadoutBlockPallas(mul_in, n_energies2, compute_nacs=True, key=k_w2)
    x2 = jax.random.normal(k_x, (N2, block2.dim_in), dtype=jnp.float32)
    out2 = jax.block_until_ready(block2(x2))
    assert out2.shape == (N2, block2.dim_out)
    np.testing.assert_allclose(np.asarray(out2), block2.reference(x2), rtol=1e-4, atol=1e-4)

    # 3) scalar-only readout (compute_nacs=False -> "2x0e")
    block3 = LinearReadoutBlockPallas(mul_in, n_energies, compute_nacs=False, key=k_w)
    out3 = jax.block_until_ready(block3(x))
    assert out3.shape == (N, n_energies)
    np.testing.assert_allclose(np.asarray(out3), block3.reference(x), rtol=1e-4, atol=1e-4)

    print("KERNEL_OK")
</pallas_src>

<mosaic_0001>
module attributes {stable_mosaic.version = 11 : i64} {
  func.func @_linear_readout_kernel(%arg0: i32, %arg1: memref<8x128xf32, #tpu.memory_space<vmem>>, %arg2: memref<128x128xbf16, #tpu.memory_space<vmem>>, %arg3: memref<8x128xf32, #tpu.memory_space<vmem>>) attributes {dimension_semantics = [#tpu.dimension_semantics<parallel>], iteration_bounds = array<i64: 1>, scalar_prefetch = 0 : i64, scratch_operands = 0 : i64, tpu.core_type = #tpu.core_type<tc>, window_params = [{transform_indices = @transform_0, window_bounds = array<i64: 8, 128>}, {pipeline_mode = #tpu.pipeline_mode<synchronous>, transform_indices = @transform_1, window_bounds = array<i64: 128, 128>}, {transform_indices = @transform_2, window_bounds = array<i64: 8, 128>}]} {
    %c0 = arith.constant 0 : index
    %c0_0 = arith.constant 0 : index
    %0 = vector.load %arg1[%c0, %c0_0] : memref<8x128xf32, #tpu.memory_space<vmem>>, vector<8x128xf32>
    %1 = arith.truncf %0 : vector<8x128xf32> to vector<8x128xbf16>
    %c0_1 = arith.constant 0 : index
    %c0_2 = arith.constant 0 : index
    %2 = vector.load %arg2[%c0_1, %c0_2] : memref<128x128xbf16, #tpu.memory_space<vmem>>, vector<128x128xbf16>
    %cst = arith.constant dense<0.000000e+00> : vector<8x128xf32>
    %3 = tpu.matmul %1, %2, %cst {dimension_numbers = #tpu.dot_dimension_numbers<[1], [0], [0], [1], [0, 0, 1, 1], [], []>} : vector<8x128xbf16>, vector<128x128xbf16>, vector<8x128xf32> -> vector<8x128xf32>
    %c0_3 = arith.constant 0 : index
    %c0_4 = arith.constant 0 : index
    %4 = vector.load %arg3[%c0_3, %c0_4] : memref<8x128xf32, #tpu.memory_space<vmem>>, vector<8x128xf32>
    tpu.vector_store %arg3[%c0_3, %c0_4], %3 {strides = array<i32>} : memref<8x128xf32, #tpu.memory_space<vmem>>, vector<8x128xf32>,
    return
  }
  func.func @transform_0(%arg0: i32) -> (i32, i32) {
    %c0_i32 = arith.constant 0 : i32
    %c0_i32_0 = arith.constant 0 : i32
    return %arg0, %c0_i32 : i32, i32
  }
  func.func @transform_1(%arg0: i32) -> (i32, i32) {
    %c0_i32 = arith.constant 0 : i32
    %c0_i32_0 = arith.constant 0 : i32
    %c0_i32_1 = arith.constant 0 : i32
    return %c0_i32, %c0_i32_0 : i32, i32
  }
  func.func @transform_2(%arg0: i32) -> (i32, i32) {
    %c0_i32 = arith.constant 0 : i32
    %c0_i32_0 = arith.constant 0 : i32
    return %arg0, %c0_i32 : i32, i32
  }
}

</mosaic_0001>

<bundles_post_ra>
// kernel: tpu_custom_call.1
= control target key start
LH: loop header
LB: loop body
LE: loop exit
PB: predicated region body
PF: predicated region fallthrough
CT: control target
= control target key end

     0   :  { %7 = vsyncpa [#allocation3], 0  ;;  %s351_s0 = inlined_call_operand.hbm [shape: f32[8,128], index: 0, kind: input, shape index: {}]   ;;  %s352_s1 = inlined_call_operand.hbm [shape: bf16[128,128], index: 1, kind: input, shape index: {}]   ;;  %s353_s2 = inlined_call_operand.hbm [shape: f32[8,128], index: 2, kind: output, shape index: {}]  }
   0x1   :  { %8 = vsyncpa [#allocation6], 0 }
   0x2   :  { %9 = vsyncpa [#allocation4], 0  ;;  %s286_s9 = smov [#allocation2]   ;;  %s287_s11 = smov [#allocation5]  }
   0x3   :  { %s16_s10 = sshll.u32 %s286_s9, 4  ;;  %s25_s12 = sshll.u32 %s287_s11, 4  ;;  %s17_s10 = int_to_ptr.vmem [resolvable:$true] %s16_s10  ;;  %s308_s12 = int_to_ptr.vmem [resolvable:$true] %s25_s12 }
   0x4   :  { %s214_s15 = scalar_lea.hbm %s351_s0, 128 }
   0x5   :  { %p215_p0 = scmp.ne.s32.totalorder %s351_s0, %s214_s15  ;;  %p218_p1 = scmp.lt.u32.totalorder %s214_s15, %s351_s0 }
   0x7   :  { %p220_p2 = pnand %p218_p1, %p215_p0 }
   0x9   :  { %223 = shalt.err (!%p220_p2)
}
   0xa   :  { %s224_s20 = scalar_lea.vmem %s17_s10, 128  ;;  %p229_p4 = scmp.lt.s32.totalorder %s17_s10, %s17_s10 }
   0xb   :  { %p225_p3 = scmp.ne.s32.totalorder %s17_s10, %s224_s20  ;;  %p230_p5 = scmp.lt.s32.totalorder %s224_s20, %s224_s20 }
   0xd   :  { %p231_p6 = por %p230_p5, %p229_p4 }
   0xf   :  { %p232_p7 = pnand %p231_p6, %p225_p3 }
  0x11   :  { %235 = shalt.err (!%p232_p7)
}
  0x12   :  { %19 = dma.hbm_to_vmem [thread:$0]  %s351_s0, 128, %s17_s10, [#allocation3]  }
  0x13   :  { %s236_s25 = scalar_lea.hbm %s352_s1, 1024 }
  0x14   :  { %p237_p8 = scmp.ne.s32.totalorder %s352_s1, %s236_s25  ;;  %p240_p9 = scmp.lt.u32.totalorder %s236_s25, %s352_s1 }
  0x16   :  { %p242_p10 = pnand %p240_p9, %p237_p8 }
  0x18   :  { %245 = shalt.err (!%p242_p10)
}
  0x19   :  { %s246_s30 = scalar_lea.vmem %s308_s12, 1024  ;;  %p251_p12 = scmp.lt.s32.totalorder %s308_s12, %s308_s12 }
  0x1a   :  { %p247_p11 = scmp.ne.s32.totalorder %s308_s12, %s246_s30  ;;  %p252_p13 = scmp.lt.s32.totalorder %s246_s30, %s246_s30 }
  0x1c   :  { %p253_p0 = por %p252_p13, %p251_p12 }
  0x1e   :  { %p254_p1 = pnand %p253_p0, %p247_p11 }
  0x20   :  { %257 = shalt.err (!%p254_p1)
}
  0x21   :  { %s288_s0 = smov 64   ;;  %s289_s3 = smov 4  }
  0x22   :  { %31 = dma.hbm_to_vmem [thread:$0]  %s352_s1, 1024, %s308_s12, [#allocation6], %s288_s0, %s288_s0, %s289_s3  }
  0x23   :  { %280 = dma.done.wait [#allocation3], 128  }
  0x24   :  { %281 = vsyncadd [#allocation3], 4294967168 }
  0x25   :  { %282 = dma.done.wait [#allocation6], 1024  }
  0x26   :  { %283 = vsyncadd [#allocation6], 4294966272  ;;  %v290_v0 = vmov 0.0   ;;  %vm291_vm0 = vmmov 0   ;;  %v206_v1 = vld [vmem:[#allocation5] sm:$0xff]   ;;  %v207_v2 = vld [vmem:[#allocation5 + $0x8] sm:$0xff]  }
  0x27   :  { %179 = vmatprep.subr.bf16.mxu0 %v290_v0  ;;  %195 = vmatprep.mubr.msk.bf16.mxu0 %vm291_vm0, %v290_v0  ;;  %v208_v3 = vld [vmem:[#allocation5 + $0x10] sm:$0xff]   ;;  %v209_v4 = vld [vmem:[#allocation5 + $0x18] sm:$0xff]   ;;  %v210_v5 = vld [vmem:[#allocation5 + $0x20] sm:$0xff]   ;;  %s292_s1 = smov [#allocation7]  }
  0x28   :  { %180 = vmatpush3.bf16.msra.mxu0 %v206_v1  ;;  %v211_v6 = vld [vmem:[#allocation5 + $0x28] sm:$0xff]   ;;  %v212_v7 = vld [vmem:[#allocation5 + $0x30] sm:$0xff]   ;;  %v213_v8 = vld [vmem:[#allocation5 + $0x38] sm:$0xff]   ;;  %s152_s6 = sshll.u32 %s292_s1, 4  ;;  %s153_s6 = int_to_ptr.vmem [resolvable:$true] %s152_s6 }
  0x29   :  { %181 = vmatprep.subr.bf16.mxu0 %v290_v0  ;;  %v39_v9 = vld [vmem:[#allocation2] sm:$0xff]  ;;  %s258_s7 = scalar_lea.vmem %s153_s6, 128  ;;  %p263_p3 = scmp.lt.s32.totalorder %s153_s6, %s153_s6 }
  0x2a   :  { %v40_v10 = vpack.c.bf16 %v39_v9, %v39_v9  ;;  %p259_p2 = scmp.ne.s32.totalorder %s153_s6, %s258_s7  ;;  %p264_p4 = scmp.lt.s32.totalorder %s258_s7, %s258_s7 }
  0x2c   :  { %182 = vmatpush3.bf16.msra.mxu0 %v207_v2  ;;  %p265_p5 = por %p264_p4, %p263_p3 }
  0x2d   :  { %183 = vmatprep.subr.bf16.mxu0 %v290_v0 }
  0x2e   :  { %p266_p6 = pnand %p265_p5, %p259_p2 }
  0x30   :  { %184 = vmatpush3.bf16.msra.mxu0 %v208_v3 }
  0x31   :  { %185 = vmatprep.subr.bf16.mxu0 %v290_v0 }
  0x34   :  { %186 = vmatpush3.bf16.msra.mxu0 %v209_v4 }
  0x35   :  { %187 = vmatprep.subr.bf16.mxu0 %v290_v0 }
  0x38   :  { %188 = vmatpush3.bf16.msra.mxu0 %v210_v5 }
  0x39   :  { %189 = vmatprep.subr.bf16.mxu0 %v290_v0 }
  0x3c   :  { %190 = vmatpush3.bf16.msra.mxu0 %v211_v6 }
  0x3d   :  { %191 = vmatprep.subr.bf16.mxu0 %v290_v0 }
  0x40   :  { %192 = vmatpush3.bf16.msra.mxu0 %v212_v7 }
  0x41   :  { %193 = vmatprep.subr.bf16.mxu0 %v290_v0 }
  0x44   :  { %194 = vmatpush3.bf16.msra.mxu0 %v213_v8 }
  0x47   :  { %196 = vmatmul.mubr.bf16.vlgmr.msra.gmra.mrb[0].mxu0 %v40_v10 }
 0x11a   :  { %v139_v11 = vpop.f32.mrb[0].mxu0 }
 0x11b   :  { %145 = vst [vmem:[#allocation7] sm:$0xff] %v139_v11  ;;  %v197_v12 = vpop.f32.mrb[1].mxu0 }
 0x11c   :  { %v142_v13 = vpop.f32.mrb[2].mxu0 }
 0x11d   :  { %269 = shalt.err (!%p266_p6)
}
 0x11e   :  { %s270_s10 = scalar_lea.hbm %s353_s2, 128 }
 0x11f   :  { %p271_p7 = scmp.ne.s32.totalorder %s353_s2, %s270_s10  ;;  %p274_p8 = scmp.lt.u32.totalorder %s270_s10, %s353_s2 }
 0x121   :  { %p276_p9 = pnand %p274_p8, %p271_p7 }
 0x123   :  { %279 = shalt.err (!%p276_p9)
}
 0x124   :  { %155 = dma.vmem_to_hbm [thread:$0]  %s153_s6, 128, %s353_s2, [#allocation4]   ;;  %v198_v14 = vpop.f32.mrb[3].mxu0 }
 0x125   :  { %284 = dma.done.wait [#allocation4], 128  }
 0x126   :  { %285 = vsyncadd [#allocation4], 4294967168 }
 0x127   :  { %159 = vsyncpa [#allocation3], 1 }
 0x128   :  { %160 = vsyncpa [#allocation6], 1 }
 0x129   :  { %161 = vsyncpa [#allocation4], 1 }

</bundles_post_ra>
